<compile_context>
chip_gen: v7x
topology: tpu7x:2x2x1
jax: 0.10.0
libtpu: 0.0.40
codegen_flags: <defaults>
</compile_context>

<pallas_src>
import math

import jax
import jax.numpy as jnp
from jax import lax
from jax.experimental import pallas as pl
from jax.experimental.pallas import tpu as pltpu


def _round_up(x, m):
    return ((x + m - 1) // m) * m


def _masked_scores(q, k, msk, scale, lk_valid, tk, ki):
    """scores = (q @ k^T) * scale, with user mask + kv-padding mask applied (f32)."""
    s = lax.dot_general(
        q, k,
        dimension_numbers=(((1,), (1,)), ((), ())),
        preferred_element_type=jnp.float32,
    ) * jnp.float32(scale)

    if msk is not None:
        s = jnp.where(msk < 0.5, jnp.float32(-1.0e9), s)

    if lk_valid is not None:
        # Padding-only kv positions get a value far below -1e9 so fully-masked rows
        # still normalize over the *real* Lk positions (matches the reference's
        # uniform softmax in that degenerate case).
        kv_pos = ki * tk + lax.broadcasted_iota(jnp.int32, s.shape, 1)
        s = jnp.where(kv_pos < lk_valid, s, jnp.float32(-1.0e30))
    return s


def _make_single_kv_kernel(scale, lk_valid, tk, has_mask):
    """Fast path: the whole kv axis fits in one tile -> plain softmax, no scratch."""

    def kernel(*refs):
        if has_mask:
            q_ref, k_ref, v_ref, msk_ref, o_ref = refs
            msk = msk_ref[0]
        else:
            q_ref, k_ref, v_ref, o_ref = refs
            msk = None

        q = q_ref[0]  # (tq, dk_p)
        k = k_ref[0]  # (tk, dk_p)
        v = v_ref[0]  # (tk, dk_p)

        s = _masked_scores(q, k, msk, scale, lk_valid, tk, 0)

        m = s.max(axis=-1, keepdims=True)
        p = jnp.exp(s - m)
        l = p.sum(axis=-1, keepdims=True)
        o = lax.dot_general(
            p.astype(v.dtype), v,
            dimension_numbers=(((1,), (0,)), ((), ())),
            preferred_element_type=jnp.float32,
        ) * pl.reciprocal(l, approx=True)
        o_ref[0] = o.astype(o_ref.dtype)

    return kernel


def _make_flash_kernel(scale, lk_valid, tk, has_mask):
    """General path: online softmax over the kv grid axis (innermost, 'arbitrary')."""

    def kernel(*refs):
        if has_mask:
            q_ref, k_ref, v_ref, msk_ref, o_ref, m_sc, l_sc, acc_sc = refs
            msk = msk_ref[0]
        else:
            q_ref, k_ref, v_ref, o_ref, m_sc, l_sc, acc_sc = refs
            msk = None

        ki = pl.program_id(2)

        @pl.when(ki == 0)
        def _():
            m_sc[...] = jnp.full_like(m_sc, -jnp.inf)
            l_sc[...] = jnp.zeros_like(l_sc)
            acc_sc[...] = jnp.zeros_like(acc_sc)

        q = q_ref[0]  # (tq, dk_p)
        k = k_ref[0]  # (tk, dk_p)
        v = v_ref[0]  # (tk, dk_p)

        s = _masked_scores(q, k, msk, scale, lk_valid, tk, ki)

        m_prev = m_sc[...]
        m_new = jnp.maximum(m_prev, s.max(axis=-1, keepdims=True))
        alpha = jnp.exp(m_prev - m_new)
        p = jnp.exp(s - m_new)
        l_sc[...] = alpha * l_sc[...] + p.sum(axis=-1, keepdims=True)
        acc_sc[...] = alpha * acc_sc[...] + lax.dot_general(
            p.astype(v.dtype), v,
            dimension_numbers=(((1,), (0,)), ((), ())),
            preferred_element_type=jnp.float32,
        )
        m_sc[...] = m_new

        @pl.when(ki == pl.num_programs(2) - 1)
        def _():
            o_ref[0] = (
                acc_sc[...] * pl.reciprocal(l_sc[...], approx=True)
            ).astype(o_ref.dtype)

    return kernel


def scaled_dot_product_attention(query, key, value, mask=None, *,
                                 block_q=256, block_k=256):
    """Pallas TPU ScaledDotProductAttention.forward (eval mode: dropout=identity).

    query: [B, H, Lq, dk]; key/value: [B, H, Lk, dk]; mask: [B, H, Lq, Lk] or None.
    Returns [B, H, Lq, dk] in query.dtype (bf16 in -> bf16 out, f32 accumulation).
    """
    B, H, Lq, dk = query.shape
    Lk = key.shape[-2]
    BH = B * H
    out_dtype = query.dtype
    scale = 1.0 / math.sqrt(dk)

    # Tile sizes, clamped for short sequences but kept (8, 128)-aligned; head dim is
    # padded to a multiple of 128 so output stores are lane-dense (no vst.msk).
    tq = min(block_q, _round_up(Lq, 8))
    tk = min(block_k, _round_up(Lk, 128))
    lq_p = _round_up(Lq, tq)
    lk_p = _round_up(Lk, tk)
    dk_p = _round_up(dk, 128)

    def _prep(x, l, l_p):
        x = x.reshape(BH, l, dk)
        if l_p != l or dk_p != dk:
            x = jnp.pad(x, ((0, 0), (0, l_p - l), (0, dk_p - dk)))
        return x

    q = _prep(query, Lq, lq_p)
    k = _prep(key, Lk, lk_p)
    v = _prep(value, Lk, lk_p)

    n_q = lq_p // tq
    n_kv = lk_p // tk
    single_kv = n_kv == 1

    has_mask = mask is not None
    args = [q, k, v]

    if single_kv:
        grid = (BH, n_q)
        qo_map = lambda b, qi: (b, qi, 0)
        kv_map = lambda b, qi: (b, 0, 0)
        msk_map = lambda b, qi: (b, qi, 0)
        dim_sem = ("parallel", "parallel")
        scratch = []
        make_kernel = _make_single_kv_kernel
    else:
        grid = (BH, n_q, n_kv)
        qo_map = lambda b, qi, ki: (b, qi, 0)
        kv_map = lambda b, qi, ki: (b, ki, 0)
        msk_map = lambda b, qi, ki: (b, qi, ki)
        dim_sem = ("parallel", "parallel", "arbitrary")
        scratch = [
            pltpu.VMEM((tq, 1), jnp.float32),     # running max
            pltpu.VMEM((tq, 1), jnp.float32),     # running sum
            pltpu.VMEM((tq, dk_p), jnp.float32),  # output accumulator
        ]
        make_kernel = _make_flash_kernel

    in_specs = [
        pl.BlockSpec((1, tq, dk_p), qo_map),
        pl.BlockSpec((1, tk, dk_p), kv_map),
        pl.BlockSpec((1, tk, dk_p), kv_map),
    ]

    if has_mask:
        # Compress the mask stream: 0/1 "keep" flags in bf16 (half the HBM bytes of
        # an f32 mask).  Padded kv regions are handled in-kernel via validity masking.
        keep = (mask >= 0.5).reshape(BH, Lq, Lk).astype(jnp.bfloat16)
        if lq_p != Lq or lk_p != Lk:
            keep = jnp.pad(keep, ((0, 0), (0, lq_p - Lq), (0, lk_p - Lk)),
                           constant_values=1.0)
        in_specs.append(pl.BlockSpec((1, tq, tk), msk_map))
        args.append(keep)

    kernel = make_kernel(
        scale=scale,
        lk_valid=Lk if lk_p != Lk else None,
        tk=tk,
        has_mask=has_mask,
    )

    out = pl.pallas_call(
        kernel,
        out_shape=jax.ShapeDtypeStruct((BH, lq_p, dk_p), out_dtype),
        grid_spec=pltpu.PrefetchScalarGridSpec(
            num_scalar_prefetch=0,
            grid=grid,
            in_specs=in_specs,
            out_specs=pl.BlockSpec((1, tq, dk_p), qo_map),
            scratch_shapes=scratch,
        ),
        compiler_params=pltpu.CompilerParams(
            dimension_semantics=dim_sem,
        ),
    )(*args)

    return out[:, :Lq, :dk].reshape(B, H, Lq, dk)


def _reference(query, key, value, mask=None):
    dk = query.shape[-1]
    q = query.astype(jnp.float32)
    k = key.astype(jnp.float32)
    v = value.astype(jnp.float32)
    scores = jnp.einsum("bhqd,bhkd->bhqk", q, k) / math.sqrt(dk)
    if mask is not None:
        scores = jnp.where(mask.astype(jnp.float32) < 0.5, -1.0e9, scores)
    attn = jax.nn.softmax(scores, axis=-1)
    return jnp.einsum("bhqk,bhkd->bhqd", attn, v)


if __name__ == "__main__":
    key0 = jax.random.PRNGKey(0)
    kq, kk, kv, km = jax.random.split(key0, 4)

    # --- Small shapes (single kv-tile fast path) ---------------------------------
    B, H, Lq, Lk, dk = 2, 2, 8, 8, 32
    query = jax.random.normal(kq, (B, H, Lq, dk), dtype=jnp.float32)
    key_ = jax.random.normal(kk, (B, H, Lk, dk), dtype=jnp.float32)
    value = jax.random.normal(kv, (B, H, Lk, dk), dtype=jnp.float32)
    # Deterministic 0/1 mask (keep ~80% of entries).
    mask = (jax.random.uniform(km, (B, H, Lq, Lk)) > 0.2).astype(jnp.float32)

    ref = _reference(query, key_, value, mask)

    # f32 path with mask.
    out = jax.block_until_ready(scaled_dot_product_attention(query, key_, value, mask))
    assert out.shape == (B, H, Lq, dk)
    assert jnp.allclose(out, ref, atol=2e-3, rtol=2e-3)

    # Specialized no-mask path (no fabricated ones tensor, no mask DMA).
    out_nm = jax.block_until_ready(scaled_dot_product_attention(query, key_, value))
    ref_nm = _reference(query, key_, value)
    assert jnp.allclose(out_nm, ref_nm, atol=2e-3, rtol=2e-3)

    # bf16 path: bf16 MXU matmuls with f32 accumulation, bf16 output.
    qb, kb, vb = (x.astype(jnp.bfloat16) for x in (query, key_, value))
    out_bf = jax.block_until_ready(scaled_dot_product_attention(qb, kb, vb, mask))
    assert out_bf.dtype == jnp.bfloat16
    assert jnp.allclose(out_bf.astype(jnp.float32), ref, atol=6e-2, rtol=6e-2)

    # --- Longer kv (exercises the multi-kv-tile online-softmax path + padding) ---
    B2, H2, Lq2, Lk2 = 1, 2, 40, 300
    kq2, kk2, kv2, km2 = jax.random.split(jax.random.PRNGKey(1), 4)
    q2 = jax.random.normal(kq2, (B2, H2, Lq2, dk), dtype=jnp.float32)
    k2 = jax.random.normal(kk2, (B2, H2, Lk2, dk), dtype=jnp.float32)
    v2 = jax.random.normal(kv2, (B2, H2, Lk2, dk), dtype=jnp.float32)
    m2 = (jax.random.uniform(km2, (B2, H2, Lq2, Lk2)) > 0.2).astype(jnp.float32)

    ref2 = _reference(q2, k2, v2, m2)
    out2 = jax.block_until_ready(scaled_dot_product_attention(q2, k2, v2, m2))
    assert out2.shape == (B2, H2, Lq2, dk)
    assert jnp.allclose(out2, ref2, atol=2e-3, rtol=2e-3)

    out2_nm = jax.block_until_ready(scaled_dot_product_attention(q2, k2, v2))
    ref2_nm = _reference(q2, k2, v2)
    assert jnp.allclose(out2_nm, ref2_nm, atol=2e-3, rtol=2e-3)

    print("KERNEL_OK")
</pallas_src>

<mosaic_0001>
module attributes {stable_mosaic.version = 11 : i64} {
  func.func @kernel(%arg0: i32, %arg1: i32, %arg2: memref<1x8x128xf32, #tpu.memory_space<vmem>>, %arg3: memref<1x128x128xf32, #tpu.memory_space<vmem>>, %arg4: memref<1x128x128xf32, #tpu.memory_space<vmem>>, %arg5: memref<1x8x128xbf16, #tpu.memory_space<vmem>>, %arg6: memref<1x8x128xf32, #tpu.memory_space<vmem>>) attributes {dimension_semantics = [#tpu.dimension_semantics<parallel>, #tpu.dimension_semantics<parallel>], iteration_bounds = array<i64: 4, 1>, scalar_prefetch = 0 : i64, scratch_operands = 0 : i64, tpu.core_type = #tpu.core_type<tc>, window_params = [{transform_indices = @transform_0, window_bounds = array<i64: 1, 8, 128>}, {transform_indices = @transform_1, window_bounds = array<i64: 1, 128, 128>}, {transform_indices = @transform_2, window_bounds = array<i64: 1, 128, 128>}, {transform_indices = @transform_3, window_bounds = array<i64: 1, 8, 128>}, {transform_indices = @transform_4, window_bounds = array<i64: 1, 8, 128>}]} {
    %c0 = arith.constant 0 : index
    %c0_0 = arith.constant 0 : index
    %c0_1 = arith.constant 0 : index
    %0 = vector.load %arg5[%c0, %c0_0, %c0_1] : memref<1x8x128xbf16, #tpu.memory_space<vmem>>, vector<1x8x128xbf16>
    %1 = vector.shape_cast %0 : vector<1x8x128xbf16> to vector<8x128xbf16>
    %c0_2 = arith.constant 0 : index
    %c0_3 = arith.constant 0 : index
    %c0_4 = arith.constant 0 : index
    %2 = vector.load %arg2[%c0_2, %c0_3, %c0_4] : memref<1x8x128xf32, #tpu.memory_space<vmem>>, vector<1x8x128xf32>
    %3 = vector.shape_cast %2 : vector<1x8x128xf32> to vector<8x128xf32>
    %c0_5 = arith.constant 0 : index
    %c0_6 = arith.constant 0 : index
    %c0_7 = arith.constant 0 : index
    %4 = vector.load %arg3[%c0_5, %c0_6, %c0_7] : memref<1x128x128xf32, #tpu.memory_space<vmem>>, vector<1x128x128xf32>
    %5 = vector.shape_cast %4 : vector<1x128x128xf32> to vector<128x128xf32>
    %c0_8 = arith.constant 0 : index
    %c0_9 = arith.constant 0 : index
    %c0_10 = arith.constant 0 : index
    %6 = vector.load %arg4[%c0_8, %c0_9, %c0_10] : memref<1x128x128xf32, #tpu.memory_space<vmem>>, vector<1x128x128xf32>
    %7 = vector.shape_cast %6 : vector<1x128x128xf32> to vector<128x128xf32>
    %cst = arith.constant dense<0.000000e+00> : vector<8x128xf32>
    %8 = tpu.matmul %3, %5, %cst {dimension_numbers = #tpu.dot_dimension_numbers<[1], [1], [0], [0], [0, 0, 1, 0], [], []>} : vector<8x128xf32>, vector<128x128xf32>, vector<8x128xf32> -> vector<8x128xf32>
    %cst_11 = arith.constant 0.176776692 : f32
    %9 = vector.broadcast %cst_11 : f32 to vector<8x128xf32>
    %10 = arith.mulf %8, %9 : vector<8x128xf32>
    %cst_12 = arith.constant 5.000000e-01 : bf16
    %11 = vector.broadcast %cst_12 : bf16 to vector<8x128xbf16>
    %12 = arith.cmpf olt, %1, %11 : vector<8x128xbf16>
    %cst_13 = arith.constant -1.000000e+09 : f32
    %13 = vector.broadcast %cst_13 : f32 to vector<8x128xf32>
    %14 = arith.select %12, %13, %10 : vector<8x128xi1>, vector<8x128xf32>
    %15 = tpu.iota {dimensions = array<i32: 1>} : vector<8x128xi32>
    %c0_i32 = arith.constant 0 : i32
    %16 = vector.broadcast %c0_i32 : i32 to vector<8x128xi32>
    %17 = arith.addi %16, %15 : vector<8x128xi32>
    %c8_i32 = arith.constant 8 : i32
    %18 = vector.broadcast %c8_i32 : i32 to vector<8x128xi32>
    %19 = arith.cmpi slt, %17, %18 : vector<8x128xi32>
    %cst_14 = arith.constant -1.000000e+30 : f32
    %20 = vector.broadcast %cst_14 : f32 to vector<8x128xf32>
    %21 = arith.select %19, %14, %20 : vector<8x128xi1>, vector<8x128xf32>
    %cst_15 = arith.constant dense<0xFF800000> : vector<8xf32>
    %22 = vector.multi_reduction <maximumf>, %21, %cst_15 [1] : vector<8x128xf32> to vector<8xf32>
    %23 = vector.shape_cast %22 : vector<8xf32> to vector<8x1xf32>
    %24 = vector.broadcast %23 : vector<8x1xf32> to vector<8x128xf32>
    %25 = arith.subf %21, %24 : vector<8x128xf32>
    %26 = math.exp %25 : vector<8x128xf32>
    %cst_16 = arith.constant dense<0.000000e+00> : vector<8xf32>
    %27 = vector.multi_reduction <add>, %26, %cst_16 [1] : vector<8x128xf32> to vector<8xf32>
    %28 = vector.shape_cast %27 : vector<8xf32> to vector<8x1xf32>
    %cst_17 = arith.constant dense<0.000000e+00> : vector<8x128xf32>
    %29 = tpu.matmul %26, %7, %cst_17 {dimension_numbers = #tpu.dot_dimension_numbers<[1], [0], [0], [1], [0, 0, 1, 1], [], []>} : vector<8x128xf32>, vector<128x128xf32>, vector<8x128xf32> -> vector<8x128xf32>
    %30 = tpu.reciprocal %28 {approx = true} : vector<8x1xf32> -> vector<8x1xf32>
    %31 = vector.broadcast %30 : vector<8x1xf32> to vector<8x128xf32>
    %32 = arith.mulf %29, %31 : vector<8x128xf32>
    %c0_18 = arith.constant 0 : index
    %c0_19 = arith.constant 0 : index
    %c0_20 = arith.constant 0 : index
    %33 = vector.load %arg6[%c0_18, %c0_19, %c0_20] : memref<1x8x128xf32, #tpu.memory_space<vmem>>, vector<1x8x128xf32>
    %34 = vector.shape_cast %33 : vector<1x8x128xf32> to vector<8x128xf32>
    %35 = vector.shape_cast %32 : vector<8x128xf32> to vector<1x8x128xf32>
    tpu.vector_store %arg6[%c0_18, %c0_19, %c0_20], %35 {strides = array<i32>} : memref<1x8x128xf32, #tpu.memory_space<vmem>>, vector<1x8x128xf32>,
    return
  }
  func.func @transform_0(%arg0: i32, %arg1: i32) -> (i32, i32, i32) {
    %c0_i32 = arith.constant 0 : i32
    %c0_i32_0 = arith.constant 0 : i32
    return %arg0, %arg1, %c0_i32 : i32, i32, i32
  }
  func.func @transform_1(%arg0: i32, %arg1: i32) -> (i32, i32, i32) {
    %c0_i32 = arith.constant 0 : i32
    %c0_i32_0 = arith.constant 0 : i32
    %c0_i32_1 = arith.constant 0 : i32
    return %arg0, %c0_i32, %c0_i32_0 : i32, i32, i32
  }
  func.func @transform_2(%arg0: i32, %arg1: i32) -> (i32, i32, i32) {
    %c0_i32 = arith.constant 0 : i32
    %c0_i32_0 = arith.constant 0 : i32
    %c0_i32_1 = arith.constant 0 : i32
    return %arg0, %c0_i32, %c0_i32_0 : i32, i32, i32
  }
  func.func @transform_3(%arg0: i32, %arg1: i32) -> (i32, i32, i32) {
    %c0_i32 = arith.constant 0 : i32
    %c0_i32_0 = arith.constant 0 : i32
    return %arg0, %arg1, %c0_i32 : i32, i32, i32
  }
  func.func @transform_4(%arg0: i32, %arg1: i32) -> (i32, i32, i32) {
    %c0_i32 = arith.constant 0 : i32
    %c0_i32_0 = arith.constant 0 : i32
    return %arg0, %arg1, %c0_i32 : i32, i32, i32
  }
}

</mosaic_0001>

<bundles_post_ra>
// kernel: tpu_custom_call.1
= control target key start
LH: loop header
LB: loop body
LE: loop exit
PB: predicated region body
PF: predicated region fallthrough
CT: control target
= control target key end

     0   :  { %s1579_s0 = inlined_call_operand.hbm [shape: f32[4,8,128], index: 0, kind: input, shape index: {}]   ;;  %s1580_s1 = inlined_call_operand.hbm [shape: f32[4,128,128], index: 1, kind: input, shape index: {}]   ;;  %s1581_s2 = inlined_call_operand.hbm [shape: f32[4,128,128], index: 2, kind: input, shape index: {}]   ;;  %s1582_s3 = inlined_call_operand.hbm [shape: bf16[4,8,128], index: 3, kind: input, shape index: {}]   ;;  %s1583_s4 = inlined_call_operand.hbm [shape: f32[4,8,128], index: 4, kind: output, shape index: {}]  }
   0x1   :  { %1593 = sst [smem:[#allocation19_spill]] %s1580_s1 }
   0x2   :  { %9 = vsyncpa [#allocation3], 0 }
   0x3   :  { %11 = vsyncpa [#allocation3 + $0x1], 0 }
   0x4   :  { %12 = vsyncpa [#allocation6], 0 }
   0x5   :  { %14 = vsyncpa [#allocation6 + $0x1], 0 }
   0x6   :  { %15 = vsyncpa [#allocation9], 0 }
   0x7   :  { %17 = vsyncpa [#allocation9 + $0x1], 0 }
   0x8   :  { %18 = vsyncpa [#allocation4], 0 }
   0x9   :  { %20 = vsyncpa [#allocation4 + $0x1], 0  ;;  %s1219_s15 = smov 0   ;;  %s1221_s16 = smov 0  }
   0xa   :  { %s1223_s17 = smov 0   ;;  %s1225_s18 = smov 0  }
   0xb   :  { %s1227_s19 = smov 0   ;;  %s1229_s20 = smov 0  }
   0xc LB: > { %1594 = sst [smem:[#allocation15_spill]] %s1169_s17  ;;  %s1250_s21 = sadd.s32 4294967295, %s1181_s20   ;;  %s1181_s20 = sphi %s1229_s20, %s26_s20   ;;  %s1177_s19 = sphi %s1227_s19, %s1621_s19   ;;  %s1173_s18 = sphi %s1225_s18, %s1620_s18   ;;  %s1169_s17 = sphi %s1223_s17, %s1616_s17   ;;  %s1165_s16 = sphi %s1221_s16, %s1619_s16   ;;  %s1161_s15 = sphi %s1219_s15, %s1618_s15  }
   0xd   : > { %s707_s22 = sadd.s32 4294967294, %s1181_s20   ;;  %s38_s23 = sadd.s32 1, %s1177_s19 }
   0xe   : > { %s47_s24 = sadd.s32 1, %s1169_s17  ;;  %p40_p0 = scmp.ge.s32.totalorder %s38_s23, 4 }
   0xf   : > { %p54_p1 = scmp.ne.s32.totalorder %s1169_s17, %s1165_s16  ;;  %p55_p2 = scmp.eq.s32.totalorder %s1181_s20, 0 }
  0x10   : > { %p60_p3 = scmp.ne.s32.totalorder %s1165_s16, %s1161_s15  ;;  %s1623_s23 = smov (%p40_p0, %s38_s23), 0 }
  0x11   : > { %1595 = sst [smem:[#allocation16_spill]] %s1623_s23  ;;  %p1262_p4 = por %p55_p2, %p54_p1 }
  0x12   : > { %p61_p5 = scmp.eq.s32.totalorder %s1250_s21, 0  ;;  %s42_s26 = ssub.s32 %s1177_s19, %s1623_s23 }
  0x13   : > { %p166_p6 = scmp.eq.s32.totalorder %s1250_s21, 3  ;;  %p45_p7 = scmp.eq.s32.totalorder %s42_s26, 0 }
  0x14   : > { %p1270_p8 = por %p61_p5, %p60_p3  ;;  %p172_p10 = scmp.eq.s32.totalorder %s707_s22, 3 }
  0x15   : > { %p1274_p9 = por %p166_p6, %p54_p1  ;;  %p911_p12 = scmp.lt.s32.totalorder %s1181_s20, 4 }
  0x16   : > { %s1597_s27 = scalar_select %p1270_p8, 1, 0 }
  0x17   : > { %s1598_s28 = scalar_select %p1274_p9, 1, 0 }
  0x18   : > { %s1279_s29 = scalar_select %p45_p7, %s1169_s17, %s47_s24  }
  0x19   : > { %p1281_p11 = por %p172_p10, %p60_p3  ;;  %s1287_s5 = sand.u32 1, %s1169_s17  }
  0x1a   : > { %1599 = sst [smem:[#allocation17_spill]] %s1279_s29  ;;  %s211_s6 = sand.u32 1, %s1181_s20  }
  0x1b   : > { %s1600_s30 = scalar_select %p1281_p11, 1, 0 }
  0x1c   : > { %s1584_s7 = sshll.u32 %s1287_s5, 7  ;;  %p1293_p13 = pnand %p911_p12, %p1262_p4 }
  0x1d   : > { %1601 = sst [smem:[#allocation18_spill]] %s1600_s30  ;;  %s730_s9 = sshll.u32 %s1177_s19, 11 }
  0x1e   : > { %s1602_s8 = scalar_select %p1293_p13, 1, 0 }
  0x1f   : > { %s1603_s1 = sld [smem:[#allocation19_spill]]  ;;  %s215_s13 = scalar_lea.vmem [#allocation5], %s1584_s7 }
  0x20   : > { %s222_s14 = sshll.u32 %s215_s13, 4  ;;  %s1309_s22 = scalar_lea.sflag [#allocation6], %s211_s6  ;;  %s1307_s14 = int_to_ptr.vmem [resolvable:$true] %s222_s14 }
  0x21   : > { %p1315_p1 = pneg %p1293_p13 }
  0x25   : > { %s1303_s12 = scalar_lea.hbm %s1603_s1, %s730_s9  ;;  %s976_s11 = scalar_lea.hbm %s1603_s1, 8192 }
  0x26   : > { %s971_s24 = scalar_lea.hbm %s1303_s12, 2048  ;;  %p977_p4 = scmp.lt.u32.totalorder %s1303_s12, %s1603_s1 }
  0x27   : > { %p972_p0 = scmp.ne.s32.totalorder %s1303_s12, %s971_s24  ;;  %p978_p5 = scmp.lt.u32.totalorder %s976_s11, %s971_s24 }
  0x28   : > { %p980_p7 = scmp.lt.u32.totalorder %s971_s24, %s1303_s12 }
  0x29   : > { %p974_p2 = pnand %p1315_p1, %p972_p0  ;;  %p979_p6 = por %p978_p5, %p977_p4 }
  0x2b   : > { %p975_p3 = pneg %p974_p2  ;;  %p981_p10 = por %p980_p7, %p979_p6 }
  0x2d   : > { %p982_p12 = pnand %p981_p10, %p975_p3 }
  0x2f   : > { %985 = shalt.err (!%p982_p12)
}
  0x30   : > { %s986_s6 = scalar_lea.vmem %s1307_s14, 2048  ;;  %s1183_s26 = smov [#allocation5]  }
  0x31   : > { %p987_p0 = scmp.ne.s32.totalorder %s1307_s14, %s986_s6  ;;  %s991_s10 = sshll.u32 %s1183_s26, 4  ;;  %s992_s10 = int_to_ptr.vmem [resolvable:$false] %s991_s10 }
  0x32   : > { %s993_s7 = scalar_lea.vmem %s992_s10, 4096  ;;  %p994_p9 = scmp.lt.s32.totalorder %s1307_s14, %s992_s10 }
  0x33   : > { %p989_p2 = pnand %p987_p0, %p1315_p1  ;;  %p995_p8 = scmp.lt.s32.totalorder %s993_s7, %s986_s6 }
  0x35   : > { %p990_p11 = pneg %p989_p2  ;;  %p996_p4 = por %p995_p8, %p994_p9 }
  0x37   : > { %p997_p5 = pnand %p996_p4, %p990_p11 }
  0x39   : > { %1000 = shalt.err (!%p997_p5)
}
  0x3a   : > { %s1588_s24 = smov 128   ;;  %s1589_s11 = smov 8  }
  0x3b   : > { %900 = dma.hbm_to_vmem [thread:$0]  (!%p1293_p13), %s1303_s12, 2048, %s1307_s14, %s1309_s22, %s1588_s24, %s1588_s24, %s1589_s11  }
  0x3c   : > { %s1347_s26 = scalar_lea.hbm %s1581_s2, %s730_s9  ;;  %s1605_s10 = sshll.u32 %s1287_s5, 7 }
  0x3d   : > { %s236_s7 = scalar_lea.vmem [#allocation7], %s1605_s10  ;;  %p720_p8 = scmp.ge.s32.totalorder %s1181_s20, 1 }
  0x3e   : > { %s243_s1 = sshll.u32 %s236_s7, 4  ;;  %p270_p9 = scmp.lt.s32.totalorder %s1181_s20, 5  ;;  %s1352_s1 = int_to_ptr.vmem [resolvable:$true] %s243_s1 }
  0x3f   : > { %s710_s29 = sshll.u32 %s1287_s5, 3  ;;  %s711_s12 = sshll.u32 %s1177_s19, 7 }
  0x40   : > { %p1355_p11 = pnand %p720_p8, %p270_p9  ;;  %s1364_s13 = scalar_lea.hbm %s1579_s0, %s711_s12 }
  0x41   : > { %s196_s9 = scalar_lea.vmem [#allocation2], %s710_s29  ;;  %s718_s10 = sshll.u32 %s1287_s5, 2 }
  0x42   : > { %s1606_s23 = scalar_select %p1355_p11, 1, 0 }
  0x43   : > { %s204_s6 = sshll.u32 %s196_s9, 4  ;;  %s193_s7 = scalar_lea.sflag [#allocation3], %s1287_s5  ;;  %s1366_s6 = int_to_ptr.vmem [resolvable:$true] %s204_s6 }
  0x44   : > { %s1001_s11 = scalar_lea.hbm %s1364_s13, 128  ;;  %s1006_s24 = scalar_lea.hbm %s1579_s0, 512 }
  0x45   : > { %p1002_p3 = scmp.ne.s32.totalorder %s1364_s13, %s1001_s11  ;;  %p1007_p10 = scmp.lt.u32.totalorder %s1364_s13, %s1579_s0 }
  0x46   : > { %p1008_p12 = scmp.lt.u32.totalorder %s1006_s24, %s1001_s11  ;;  %p1010_p2 = scmp.lt.u32.totalorder %s1001_s11, %s1364_s13 }
  0x47   : > { %p1004_p6 = pnand %p1002_p3, %p1315_p1 }
  0x48   : > { %p1009_p0 = por %p1008_p12, %p1007_p10 }
  0x49   : > { %p1005_p7 = pneg %p1004_p6 }
  0x4a   : > { %p1011_p4 = por %p1010_p2, %p1009_p0 }
  0x4c   : > { %p1012_p5 = pnand %p1011_p4, %p1005_p7 }
  0x4e   : > { %1015 = shalt.err (!%p1012_p5)
}
  0x4f   : > { %s1016_s29 = scalar_lea.vmem %s1366_s6, 128  ;;  %s1186_s17 = smov [#allocation2]  }
  0x50   : > { %p1017_p8 = scmp.ne.s32.totalorder %s1366_s6, %s1016_s29  ;;  %s1021_s30 = sshll.u32 %s1186_s17, 4  ;;  %s1022_s30 = int_to_ptr.vmem [resolvable:$false] %s1021_s30 }
  0x51   : > { %s1023_s9 = scalar_lea.vmem %s1022_s30, 256  ;;  %p1024_p6 = scmp.lt.s32.totalorder %s1366_s6, %s1022_s30 }
  0x52   : > { %p1019_p9 = pnand %p1017_p8, %p1315_p1  ;;  %p1025_p11 = scmp.lt.s32.totalorder %s1023_s9, %s1016_s29 }
  0x54   : > { %p1020_p3 = pneg %p1019_p9  ;;  %p1026_p10 = por %p1025_p11, %p1024_p6 }
  0x56   : > { %p1027_p12 = pnand %p1026_p10, %p1020_p3 }
  0x58   : > { %1030 = shalt.err (!%p1027_p12)
}
  0x59   : > { %897 = dma.hbm_to_vmem [thread:$0]  (!%p1293_p13), %s1364_s13, 128, %s1366_s6, %s193_s7  }
  0x5a   : > { %s1031_s11 = scalar_lea.hbm %s1347_s26, 2048  ;;  %s1036_s14 = scalar_lea.hbm %s1581_s2, 8192 }
  0x5b   : > { %p1032_p7 = scmp.ne.s32.totalorder %s1347_s26, %s1031_s11  ;;  %p1037_p11 = scmp.lt.u32.totalorder %s1347_s26, %s1581_s2 }
  0x5c   : > { %p1038_p4 = scmp.lt.u32.totalorder %s1036_s14, %s1031_s11  ;;  %p1040_p8 = scmp.lt.u32.totalorder %s1031_s11, %s1347_s26 }
  0x5d   : > { %p1034_p0 = pnand %p1032_p7, %p1315_p1 }
  0x5e   : > { %p1039_p5 = por %p1038_p4, %p1037_p11 }
  0x5f   : > { %p1035_p2 = pneg %p1034_p0 }
  0x60   : > { %p1041_p9 = por %p1040_p8, %p1039_p5 }
  0x62   : > { %p1042_p3 = pnand %p1041_p9, %p1035_p2 }
  0x64   : > { %1045 = shalt.err (!%p1042_p3)
}
  0x65   : > { %s1046_s13 = scalar_lea.vmem %s1352_s1, 2048  ;;  %s1187_s6 = smov [#allocation7]  }
  0x66   : > { %p1047_p6 = scmp.ne.s32.totalorder %s1352_s1, %s1046_s13  ;;  %s1051_s7 = sshll.u32 %s1187_s6, 4  ;;  %s1052_s7 = int_to_ptr.vmem [resolvable:$false] %s1051_s7 }
  0x67   : > { %s1053_s30 = scalar_lea.vmem %s1052_s7, 4096  ;;  %p1054_p7 = scmp.lt.s32.totalorder %s1352_s1, %s1052_s7 }
  0x68   : > { %p1049_p10 = pnand %p1047_p6, %p1315_p1  ;;  %p1055_p0 = scmp.lt.s32.totalorder %s1053_s30, %s1046_s13 }
  0x6a   : > { %p1050_p12 = pneg %p1049_p10  ;;  %p1056_p11 = por %p1055_p0, %p1054_p7 }
  0x6c   : > { %p1057_p4 = pnand %p1056_p11, %p1050_p12 }
  0x6e   : > { %1060 = shalt.err (!%p1057_p4)
}
  0x6f   : > { %s1607_s9 = smov 8   ;;  %s1608_s11 = smov 128  }
  0x70   : > { %903 = dma.hbm_to_vmem [thread:$0]  (!%p1293_p13), %s1347_s26, 2048, %s1352_s1, %s1309_s22, %s1608_s11, %s1608_s11, %s1607_s9  }
  0x71   : > { %s719_s24 = sshll.u32 %s1177_s19, 6  ;;  %s257_s17 = scalar_lea.vmem [#allocation8], %s718_s10 }
  0x72   : > { %s1420_s29 = scalar_lea.hbm %s1582_s3, %s719_s24  ;;  %s265_s13 = sshll.u32 %s257_s17, 4  ;;  %s266_s13 = int_to_ptr.vmem [resolvable:$true] %s265_s13 }
  0x73   : > { %s254_s6 = scalar_lea.sflag [#allocation9], %s1287_s5  ;;  %s1061_s7 = scalar_lea.hbm %s1420_s29, 64 }
  0x74   : > { %p1062_p2 = scmp.ne.s32.totalorder %s1420_s29, %s1061_s7  ;;  %s1066_s26 = scalar_lea.hbm %s1582_s3, 256 }
  0x75   : > { %p1067_p9 = scmp.lt.u32.totalorder %s1420_s29, %s1582_s3  ;;  %p1068_p3 = scmp.lt.u32.totalorder %s1066_s26, %s1061_s7 }
  0x76   : > { %p1064_p5 = pnand %p1062_p2, %p1315_p1  ;;  %p1070_p10 = scmp.lt.u32.totalorder %s1061_s7, %s1420_s29 }
  0x77   : > { %p1069_p6 = por %p1068_p3, %p1067_p9 }
  0x78   : > { %p1065_p8 = pneg %p1064_p5 }
  0x79   : > { %p1071_p12 = por %p1070_p10, %p1069_p6 }
  0x7b   : > { %p1072_p7 = pnand %p1071_p12, %p1065_p8 }
  0x7d   : > { %1075 = shalt.err (!%p1072_p7)
}
  0x7e   : > { %s1076_s5 = scalar_lea.vmem %s266_s13, 64  ;;  %s1188_s10 = smov [#allocation8]  }
  0x7f   : > { %p1077_p0 = scmp.ne.s32.totalorder %s266_s13, %s1076_s5  ;;  %s1081_s11 = sshll.u32 %s1188_s10, 4  ;;  %s1082_s11 = int_to_ptr.vmem [resolvable:$false] %s1081_s11 }
  0x80   : > { %s1083_s24 = scalar_lea.vmem %s1082_s11, 128  ;;  %p1084_p2 = scmp.lt.s32.totalorder %s266_s13, %s1082_s11 }
  0x81   : > { %p1079_p11 = pnand %p1077_p0, %p1315_p1  ;;  %p1085_p5 = scmp.lt.s32.totalorder %s1083_s24, %s1076_s5 }
  0x83   : > { %p1080_p4 = pneg %p1079_p11  ;;  %p1086_p13 = por %p1085_p5, %p1084_p2 }
  0x85   : > { %p1087_p3 = pnand %p1086_p13, %p1080_p4 }
  0x87   : > { %1090 = shalt.err (!%p1087_p3)
}
  0x88   : > { %p1609_p9 = scmp.ne.s32.totalorder %s1602_s8, 0  ;;  %p1610_p8 = scmp.ne.s32.totalorder %s1606_s23, 0 }
  0x89   : > { %s1445_s25 = sand.u32 (!%p1610_p8), 1, %s1165_s16   ;;  %p1611_p13 = scmp.ne.s32.totalorder (!%p1610_p8), %s1597_s27, 0 }
  0x8a   : > { %906 = dma.hbm_to_vmem [thread:$0]  (!%p1609_p9), %s1420_s29, 64, %s266_s13, %s254_s6  }
  0x8b   : > { %274 = sbr.rel (%p1610_p8) target bundleno = 820 (0x334), region = 36  ;;  %s721_s12 = sshll.u32 (!%p1610_p8), %s1445_s25, 3 }
  0x8c   : > { %s277_s14 = scalar_lea.sflag (!%p1610_p8), [#allocation3], %s1445_s25  ;;  %s1451_s17 = scalar_lea.vmem (!%p1610_p8), [#allocation2], %s721_s12 }
  0x92   : > { %1144 = dma.done.wait (%p1611_p13), %s277_s14, 128  }
  0x93   : > { %1146 = vsyncadd (%p1611_p13), %s277_s14, 4294967168  ;;  %s285_s23 = sand.u32 1, %s1250_s21   ;;  %s722_s8 = sshll.u32 %s1445_s25, 7 }
  0x94   : > { %s286_s29 = scalar_lea.sflag [#allocation6], %s285_s23  ;;  %s1459_s13 = scalar_lea.vmem [#allocation5], %s722_s8 }
  0x95   : > { %1148 = dma.done.wait (%p1611_p13), %s286_s29, 4096  }
  0x96   : > { %1150 = vsyncadd (%p1611_p13), %s286_s29, 4294963200  ;;  %s724_s6 = sshll.u32 %s1445_s25, 2  ;;  %s1466_s7 = scalar_lea.vmem [#allocation7], %s722_s8 }
  0x97   : > { %s304_s1 = scalar_lea.sflag [#allocation9], %s1445_s25  ;;  %s1469_s22 = scalar_lea.vmem [#allocation8], %s724_s6 }
  0x98   : > { %1152 = dma.done.wait (%p1611_p13), %s304_s1, 64  }
  0x99   : > { %1154 = vsyncadd (%p1611_p13), %s304_s1, 4294967232  ;;  %v1189_v0 = vmov 0.0|0.0   ;;  %vm1190_vm0 = vmmov 0   ;;  %v1191_v1 = vmov 0.0   ;;  %v352_v2 = vld [vmem:[%s1459_s13] sm:$0xff]  ;;  %v353_v3 = vld [vmem:[%s1459_s13 + $0x8] sm:$0xff]  ;;  %v460_v42 = vlaneseq }
  0x9a   : > { %836 = vmatprep.subr.bf16.mxu0 %v1189_v0  ;;  %798 = vmatprep.mubr.msk.f32.mxu0 %vm1190_vm0, %v1191_v1  ;;  %v837_v4 = vpack.c.bf16 %v353_v3, %v352_v2  ;;  %v354_v5 = vld [vmem:[%s1459_s13 + $0x10] sm:$0xff]  ;;  %v355_v6 = vld [vmem:[%s1459_s13 + $0x18] sm:$0xff]  ;;  %v356_v8 = vld [vmem:[%s1459_s13 + $0x20] sm:$0xff]  ;;  %v1192_v40 = vmov 0   ;;  %s727_s21 = sshll.u32 %s1173_s18, 7  ;;  %s346_s27 = scalar_lea.vmem [#allocation10], %s721_s12 }
  0x9b   : > { %860 = vmatprep.subr.bf16.mxu1 %v1189_v0  ;;  %833 = vmatprep.mubr.msk.f32.mxu1 %vm1190_vm0, %v1191_v1  ;;  %v840_v7 = vpack.c.bf16 %v355_v6, %v354_v5  ;;  %v357_v9 = vld [vmem:[%s1459_s13 + $0x28] sm:$0xff]  ;;  %v358_v11 = vld [vmem:[%s1459_s13 + $0x30] sm:$0xff]  ;;  %v359_v12 = vld [vmem:[%s1459_s13 + $0x38] sm:$0xff]  ;;  %v461_v44 = vand.u32 127, %v460_v42  ;;  %s559_s26 = sshll.u32 %s346_s27, 4  ;;  %s1531_s5 = scalar_lea.hbm %s1583_s4, %s727_s21  ;;  %s1533_s26 = int_to_ptr.vmem [resolvable:$true] %s559_s26 }
  0x9c   : > { %838 = vmatpush3.bf16.xpose.msra.mxu0 %v837_v4  ;;  %v843_v10 = vpack.c.bf16 %v357_v9, %v356_v8  ;;  %v846_v13 = vpack.c.bf16 %v359_v12, %v358_v11  ;;  %v360_v14 = vld [vmem:[%s1459_s13 + $0x40] sm:$0xff]  ;;  %v361_v15 = vld [vmem:[%s1459_s13 + $0x48] sm:$0xff]  ;;  %v362_v17 = vld [vmem:[%s1459_s13 + $0x50] sm:$0xff]  ;;  %s545_s10 = scalar_lea.sflag [#allocation4], %s1445_s25  ;;  %s1091_s18 = scalar_lea.vmem %s1533_s26, 128 }
  0x9d   : > { %839 = vmatprep.subr.bf16.mxu0 %v1189_v0  ;;  %v849_v16 = vpack.c.bf16 %v361_v15, %v360_v14  ;;  %v363_v18 = vld [vmem:[%s1459_s13 + $0x58] sm:$0xff]  ;;  %v364_v20 = vld [vmem:[%s1459_s13 + $0x60] sm:$0xff]  ;;  %v365_v21 = vld [vmem:[%s1459_s13 + $0x68] sm:$0xff]  ;;  %vm462_vm3 = vcmp.lt.s32.totalorder %v461_v44, 8  ;;  %p1092_p1 = scmp.ne.s32.totalorder %s1533_s26, %s1091_s18  ;;  %p1612_p6 = scmp.ne.s32.totalorder %s1598_s28, 0 }
  0x9e   : > { %v852_v19 = vpack.c.bf16 %v363_v18, %v362_v17  ;;  %v855_v22 = vpack.c.bf16 %v365_v21, %v364_v20  ;;  %v366_v23 = vld [vmem:[%s1459_s13 + $0x70] sm:$0xff]  ;;  %v367_v24 = vld [vmem:[%s1459_s13 + $0x78] sm:$0xff]  ;;  %v368_v27 = vld [vmem:[%s1466_s7] sm:$0xff]  ;;  %s1193_s11 = smov [#allocation10]  }
  0x9f   : > { %v858_v25 = vpack.c.bf16 %v367_v24, %v366_v23  ;;  %v351_v26 = vld [vmem:[%s1451_s17] sm:$0xff]  ;;  %v369_v28 = vld [vmem:[%s1466_s7 + $0x8] sm:$0xff]  ;;  %v372_v33 = vld [vmem:[%s1466_s7 + $0x20] sm:$0xff]  ;;  %p1093_p10 = pnand %p1092_p1, %p1612_p6  ;;  %s1095_s24 = sshll.u32 %s1193_s11, 4  ;;  %s1096_s24 = int_to_ptr.vmem [resolvable:$false] %s1095_s24 }
  0xa0   : > { %v370_v29 = vld [vmem:[%s1466_s7 + $0x10] sm:$0xff]  ;;  %v861_v30 = vpack.c.bf16 %v369_v28, %v368_v27  ;;  %v371_v31 = vld [vmem:[%s1466_s7 + $0x18] sm:$0xff]  ;;  %v373_v34 = vld [vmem:[%s1466_s7 + $0x28] sm:$0xff]  ;;  %s1097_s12 = scalar_lea.vmem %s1096_s24, 256  ;;  %p1098_p7 = scmp.lt.s32.totalorder %s1533_s26, %s1096_s24 }
  0xa1   : > { %v864_v32 = vpack.c.bf16 %v371_v31, %v370_v29  ;;  %v867_v35 = vpack.c.bf16 %v373_v34, %v372_v33  ;;  %v374_v36 = vld [vmem:[%s1466_s7 + $0x30] sm:$0xff]  ;;  %v375_v37 = vld [vmem:[%s1466_s7 + $0x38] sm:$0xff]  ;;  %v350_v39 = vld [vmem:[%s1469_s22] sm:$0xf]  ;;  %p1094_p12 = pneg %p1093_p10  ;;  %p1099_p0 = scmp.lt.s32.totalorder %s1097_s12, %s1091_s18 }
  0xa2   : > { %862 = vmatpush3.bf16.msra.mxu1 %v861_v30  ;;  %v870_v38 = vpack.c.bf16 %v375_v37, %v374_v36  ;;  %vm455_vm1 = vcmp.lt.bf16.partialorder %v350_v39, 1056980736  ;;  %v376_v50 = vld [vmem:[%s1466_s7 + $0x40] sm:$0xff]  ;;  %v377_v51 = vld [vmem:[%s1466_s7 + $0x48] sm:$0xff]  ;;  %v378_v53 = vld [vmem:[%s1466_s7 + $0x50] sm:$0xff] }
  0xa3   : > { %863 = vmatprep.subr.bf16.mxu1 %v1189_v0  ;;  %v456_v41 = vsel %vm455_vm1, 65537, %v1192_v40  ;;  %v873_v52 = vpack.c.bf16 %v377_v51, %v376_v50  ;;  %v379_v54 = vld [vmem:[%s1466_s7 + $0x58] sm:$0xff]  ;;  %v380_v56 = vld [vmem:[%s1466_s7 + $0x60] sm:$0xff]  ;;  %v381_v57 = vld [vmem:[%s1466_s7 + $0x68] sm:$0xff]  ;;  %p1100_p11 = por %p1099_p0, %p1098_p7 }
  0xa4   : > { %841 = vmatpush3.bf16.xpose.msra.mxu0 %v840_v7  ;;  %v457_v43 = vunpack.c.l.b16 %v456_v41  ;;  %v876_v55 = vpack.c.bf16 %v379_v54, %v378_v53  ;;  %v879_v58 = vpack.c.bf16 %v381_v57, %v380_v56  ;;  %v382_v59 = vld [vmem:[%s1466_s7 + $0x70] sm:$0xff]  ;;  %v383_v60 = vld [vmem:[%s1466_s7 + $0x78] sm:$0xff] }
  0xa5   : > { %842 = vmatprep.subr.bf16.mxu0 %v1189_v0  ;;  %v882_v61 = vpack.c.bf16 %v383_v60, %v382_v59  ;;  %p1101_p4 = pnand %p1100_p11, %p1094_p12 }
  0xa6   : > { %865 = vmatpush3.bf16.msra.mxu1 %v864_v32  ;;  %vm458_vm2 = vcmp.ne.s32.totalorder %v457_v43, 0 }
  0xa7   : > { %866 = vmatprep.subr.bf16.mxu1 %v1189_v0 }
  0xaa   : > { %868 = vmatpush3.bf16.msra.mxu1 %v867_v35 }
  0xab   : > { %869 = vmatprep.subr.bf16.mxu1 %v1189_v0 }
  0xac   : > { %844 = vmatpush3.bf16.xpose.msra.mxu0 %v843_v10 }
  0xad   : > { %845 = vmatprep.subr.bf16.mxu0 %v1189_v0 }
  0xae   : > { %871 = vmatpush3.bf16.msra.mxu1 %v870_v38 }
  0xaf   : > { %872 = vmatprep.subr.bf16.mxu1 %v1189_v0 }
  0xb2   : > { %874 = vmatpush3.bf16.msra.mxu1 %v873_v52 }
  0xb3   : > { %875 = vmatprep.subr.bf16.mxu1 %v1189_v0 }
  0xb4   : > { %847 = vmatpush3.bf16.xpose.msra.mxu0 %v846_v13 }
  0xb5   : > { %848 = vmatprep.subr.bf16.mxu0 %v1189_v0 }
  0xb6   : > { %877 = vmatpush3.bf16.msra.mxu1 %v876_v55 }
  0xb7   : > { %878 = vmatprep.subr.bf16.mxu1 %v1189_v0 }
  0xba   : > { %880 = vmatpush3.bf16.msra.mxu1 %v879_v58 }
  0xbb   : > { %881 = vmatprep.subr.bf16.mxu1 %v1189_v0 }
  0xbc   : > { %850 = vmatpush3.bf16.xpose.msra.mxu0 %v849_v16 }
  0xbd   : > { %851 = vmatprep.subr.bf16.mxu0 %v1189_v0 }
  0xbe   : > { %883 = vmatpush3.bf16.msra.mxu1 %v882_v61 }
  0xc4   : > { %853 = vmatpush3.bf16.xpose.msra.mxu0 %v852_v19 }
  0xc5   : > { %854 = vmatprep.subr.bf16.mxu0 %v1189_v0 }
  0xcc   : > { %856 = vmatpush3.bf16.xpose.msra.mxu0 %v855_v22 }
  0xcd   : > { %857 = vmatprep.subr.bf16.mxu0 %v1189_v0 }
  0xd4   : > { %859 = vmatpush3.bf16.xpose.msra.mxu0 %v858_v25 }
  0xdb   : > { %799 = vmatmul.mubr.f32.vlgmr.msra.gmra.mrb[0].mxu0 %v351_v26 }
 0x1ae   : > { %v450_v45 = vpop.f32.mrb[0].mxu0 }
 0x1af   : > { %v454_v46 = vmul.f32 0.17677669, %v450_v45  ;;  %v800_v47 = vpop.f32.mrb[1].mxu0 }
 0x1b1   : > { %v459_v48 = vsel %vm458_vm2, -1e+09, %v454_v46 }
 0x1b2   : > { %v463_v49 = vsel %vm462_vm3, %v459_v48, -1e+30 }
 0x1b3   : > { %464 = vmax.xlane.f32.xlu0 %v463_v49 }
 0x240   : > { %v465_v62 = vpop.xlane.xlu0 %464 }
 0x241   : > { %v466_v63 = vsub.f32 %v463_v49, %v465_v62 }
 0x243   : > { %v467_v1 = vmul.f32 1.442695, %v466_v63 }
 0x245   : > { %967 = vpow2.f32 %v467_v1 }
 0x24f   : > { %v968_v2 = vpop.eup %967 }
 0x250   : > { %469 = vadd.xlane.f32.xlu0 %v968_v2  ;;  %834 = vmatmul.mubr.f32.vlgmr.msra.gmra.mrb[0].mxu1 %v968_v2 }
 0x2dd   : > { %v470_v3 = vpop.xlane.xlu0 %469 }
 0x2de   : > { %969 = vrcp.f32 %v470_v3 }
 0x2e8   : > { %v970_v4 = vpop.eup %969 }
 0x323   : > { %v537_v5 = vpop.f32.mrb[0].mxu1 }
 0x324   : > { %v542_v6 = vmul.f32 %v970_v4, %v537_v5  ;;  %v835_v0 = vpop.f32.mrb[1].mxu1 }
 0x326   : > { %543 = vst [vmem:[%s346_s27] sm:$0xff] %v542_v6 }
 0x327   : > { %1104 = shalt.err (!%p1101_p4)
}
 0x328   : > { %s1105_s25 = scalar_lea.hbm %s1531_s5, 128  ;;  %s1109_s23 = scalar_lea.hbm %s1583_s4, 512 }
 0x329   : > { %p1106_p2 = scmp.ne.s32.totalorder %s1531_s5, %s1105_s25  ;;  %p1110_p9 = scmp.lt.u32.totalorder %s1531_s5, %s1583_s4 }
 0x32a   : > { %p1111_p8 = scmp.lt.u32.totalorder %s1109_s23, %s1105_s25  ;;  %p1113_p1 = scmp.lt.u32.totalorder %s1105_s25, %s1531_s5 }
 0x32b   : > { %p1107_p5 = pnand %p1106_p2, %p1612_p6 }
 0x32c   : > { %p1112_p13 = por %p1111_p8, %p1110_p9 }
 0x32d   : > { %p1108_p3 = pneg %p1107_p5 }
 0x32e   : > { %p1114_p10 = por %p1113_p1, %p1112_p13 }
 0x330   : > { %p1115_p12 = pnand %p1114_p10, %p1108_p3 }
 0x332   : > { %1118 = shalt.err (!%p1115_p12)
}
 0x333   : > { %892 = dma.vmem_to_hbm [thread:$0]  (%p1612_p6), %s1533_s26, 128, %s1531_s5, %s545_s10  }
 0x334 PF: > { %s1613_s13 = sld [smem:[#allocation18_spill]]  ;;  %p912_p7 = scmp.ge.s32.totalorder %s1181_s20, 2 }
 0x335   : > { %s571_s6 = sand.u32 1, %s1161_s15  }
 0x336   : > { %s572_s7 = scalar_lea.sflag [#allocation4], %s571_s6 }
 0x33a   : > { %p1614_p0 = scmp.ne.s32.totalorder %s1613_s13, 0 }
 0x33c   : > { %p908_p11 = pnand %p912_p7, %p1614_p0 }
 0x33e   : > { %1156 = dma.done.wait (!%p908_p11), %s572_s7, 128  }
 0x33f   : > { %1158 = vsyncadd (!%p908_p11), %s572_s7, 4294967168  ;;  %s26_s20 = sadd.s32 1, %s1181_s20   ;;  %s1615_s1 = sld [smem:[#allocation15_spill]] }
 0x340   : > { %p23_p4 = scmp.ge.s32.totalorder %s26_s20, 6   ;;  %s1616_s17 = sld [smem:[#allocation17_spill]] }
 0x341   : > { %s1617_s28 = sld [smem:[#allocation16_spill]]  ;;  %s1618_s15 = smov %s1165_s16 }
 0x342   : > { %s1620_s18 = smov %s1177_s19  ;;  %25 = sbr.rel (!%p23_p4) target bundleno = 12 (0xc), region = 118 }
 0x345   : > { %s1619_s16 = smov %s1615_s1 }
 0x347   : > { %s1621_s19 = smov %s1617_s28 }
 0x349   :  { %577 = vsyncpa [#allocation3], 1 }
 0x34a   :  { %579 = vsyncpa [#allocation3 + $0x1], 1 }
 0x34b   :  { %580 = vsyncpa [#allocation6], 1 }
 0x34c   :  { %582 = vsyncpa [#allocation6 + $0x1], 1 }
 0x34d   :  { %583 = vsyncpa [#allocation9], 1 }
 0x34e   :  { %585 = vsyncpa [#allocation9 + $0x1], 1 }
 0x34f   :  { %586 = vsyncpa [#allocation4], 1 }
 0x350   :  { %588 = vsyncpa [#allocation4 + $0x1], 1 }

</bundles_post_ra>
